<compile_context>
chip_gen: v5e
topology: v5e:2x2
jax: 0.10.0
libtpu: 0.0.40
codegen_flags: <defaults>
</compile_context>

<pallas_src>
import jax
import jax.numpy as jnp
from jax.experimental import pallas as pl
from jax.experimental.pallas import tpu as pltpu


LANE = 128        # lane width target for the (internal) hidden dim
SUBLANE = 8       # f32 sublane height
MAX_TILE_B = 2048 # max batch rows per grid step


def _round_up(n: int, m: int) -> int:
    return ((n + m - 1) // m) * m


def _pad2d(a, rows, cols):
    return jnp.pad(a, ((0, rows - a.shape[0]), (0, cols - a.shape[1])))


def chatnet_kernel(x_ref, w1_ref, b1_ref, w2_ref, b2_ref, w3_ref, b3_ref, o_ref):
    """Fused forward for one batch tile: linear1 -> relu -> linear2 -> relu -> linear3.

    x_ref is a (tb, input_size) tile; weights/biases are VMEM-resident across
    the batch grid (their block index never changes). Matmuls accumulate in f32
    on the MXU; bias-add / ReLU run in f32 on the VPU.
    """
    x = x_ref[...]

    h1 = jnp.dot(x, w1_ref[...], preferred_element_type=jnp.float32) + b1_ref[...]
    h1 = jnp.maximum(h1, 0.0)

    h2 = jnp.dot(h1.astype(w2_ref.dtype), w2_ref[...],
                 preferred_element_type=jnp.float32) + b2_ref[...]
    h2 = jnp.maximum(h2, 0.0)

    out = jnp.dot(h2.astype(w3_ref.dtype), w3_ref[...],
                  preferred_element_type=jnp.float32) + b3_ref[...]
    o_ref[...] = out.astype(o_ref.dtype)


def prepare_chatnet_params(params, *, operand_dtype=jnp.float32):
    """One-time param prep: pad the hidden dim to 128 lanes, cast matmul operands.

    Input params are stored pre-transposed to (in_features, out_features):
      w1 (in, hid), b1 (1, hid), w2 (hid, hid), b2 (1, hid), w3 (hid, out), b3 (1, out).
    Only the hidden dim is padded (x / output keep native width). Biases stay f32.
    """
    input_size, hidden_size = params["w1"].shape
    output_size = params["w3"].shape[1]
    hid_p = _round_up(hidden_size, LANE)

    return {
        "w1": _pad2d(params["w1"], input_size, hid_p).astype(operand_dtype),
        "b1": _pad2d(params["b1"], 1, hid_p).astype(jnp.float32),
        "w2": _pad2d(params["w2"], hid_p, hid_p).astype(operand_dtype),
        "b2": _pad2d(params["b2"], 1, hid_p).astype(jnp.float32),
        "w3": _pad2d(params["w3"], hid_p, output_size).astype(operand_dtype),
        "b3": params["b3"].astype(jnp.float32),
    }


def chatnet_forward(x, prepared, *, tile_b: int = MAX_TILE_B):
    """Run the fused ChatNet forward pass via pallas_call.

    Args:
      x: (batch, input_size) array.
      prepared: output of prepare_chatnet_params().
      tile_b: max batch rows per grid step.

    Returns:
      (batch, output_size) float32 logits.
    """
    batch, input_size = x.shape
    w1, b1 = prepared["w1"], prepared["b1"]
    w2, b2 = prepared["w2"], prepared["b2"]
    w3, b3 = prepared["w3"], prepared["b3"]
    assert w1.shape[0] == input_size, (w1.shape, input_size)
    hid_p = w1.shape[1]
    output_size = w3.shape[1]

    # Match matmul operand dtype chosen at prepare time (f32 or bf16).
    x = x.astype(w1.dtype)

    # Batch tile: as large as possible (amortize per-step overhead), but aim for
    # >= 2 grid steps on larger batches so v7x can split across both TensorCores.
    b_al = _round_up(batch, SUBLANE)
    half = _round_up(-(-batch // 2), SUBLANE)
    tb = max(SUBLANE, min(tile_b, b_al, half))
    batch_p = _round_up(batch, tb)
    if batch_p != batch:
        x = jnp.pad(x, ((0, batch_p - batch), (0, 0)))
    grid = (batch_p // tb,)

    # Advisory cost hint for XLA's scheduler.
    flops = 2 * batch_p * (input_size * hid_p + hid_p * hid_p + hid_p * output_size)
    bytes_accessed = (
        x.size * x.dtype.itemsize
        + sum(p.size * p.dtype.itemsize for p in (w1, b1, w2, b2, w3, b3))
        + batch_p * output_size * 4
    )
    cost = pl.CostEstimate(flops=flops, transcendentals=0,
                           bytes_accessed=bytes_accessed)

    # Weights/biases: same block index every grid step -> DMA'd once,
    # VMEM-resident across the whole batch loop.
    def resident(shape):
        return pl.BlockSpec(shape, lambda i: (0, 0))

    out_padded = pl.pallas_call(
        chatnet_kernel,
        out_shape=jax.ShapeDtypeStruct((batch_p, output_size), jnp.float32),
        grid=grid,
        in_specs=[
            pl.BlockSpec((tb, input_size), lambda i: (i, 0)),  # x: tiled over batch, native width
            resident(w1.shape), resident(b1.shape),
            resident(w2.shape), resident(b2.shape),
            resident(w3.shape), resident(b3.shape),
        ],
        out_specs=pl.BlockSpec((tb, output_size), lambda i: (i, 0)),  # native output width
        compiler_params=pltpu.CompilerParams(
            dimension_semantics=("parallel",),     # batch tiles split across TCs (v7x)
            vmem_limit_bytes=32 * 1024 * 1024,     # safe on v5e/v6e/v7x (64 MiB phys on v7x)
        ),
        cost_estimate=cost,
    )(x, w1, b1, w2, b2, w3, b3)

    # Only batch padding (if any) needs slicing away; feature dims are native.
    return out_padded[:batch] if batch_p != batch else out_padded


def init_chatnet_params(key, input_size, hidden_size, output_size):
    """Deterministic init mirroring torch.nn.Linear (uniform +/- 1/sqrt(fan_in)).

    Weights are returned transposed to (in_features, out_features) for the kernel.
    """
    def linear(key, fan_in, fan_out):
        kw, kb = jax.random.split(key)
        bound = 1.0 / jnp.sqrt(fan_in)
        w = jax.random.uniform(kw, (fan_in, fan_out), jnp.float32, -bound, bound)
        b = jax.random.uniform(kb, (1, fan_out), jnp.float32, -bound, bound)
        return w, b

    k1, k2, k3 = jax.random.split(key, 3)
    w1, b1 = linear(k1, input_size, hidden_size)
    w2, b2 = linear(k2, hidden_size, hidden_size)
    w3, b3 = linear(k3, hidden_size, output_size)
    return {"w1": w1, "b1": b1, "w2": w2, "b2": b2, "w3": w3, "b3": b3}


def chatnet_ref(x, params):
    """Pure-JAX f32 reference for correctness checking."""
    h1 = jnp.maximum(x @ params["w1"] + params["b1"], 0.0)
    h2 = jnp.maximum(h1 @ params["w2"] + params["b2"], 0.0)
    return h2 @ params["w3"] + params["b3"]


if __name__ == "__main__":
    input_size, hidden_size, output_size = 32, 64, 16
    batch = 8

    key = jax.random.PRNGKey(0)
    k_params, k_x = jax.random.split(key)
    params = init_chatnet_params(k_params, input_size, hidden_size, output_size)
    x = jax.random.normal(k_x, (batch, input_size), jnp.float32)

    # f32 path: bit-exact vs. reference.
    prepared_f32 = prepare_chatnet_params(params, operand_dtype=jnp.float32)
    out = jax.block_until_ready(chatnet_forward(x, prepared_f32))
    ref = chatnet_ref(x, params)
    assert out.shape == (batch, output_size), out.shape
    assert jnp.allclose(out, ref, atol=1e-5, rtol=1e-5), "mismatch vs JAX reference"

    # Multi-tile batch grid (>= 2 grid steps, resident weights).
    big_batch = 1024
    xb = jax.random.normal(jax.random.PRNGKey(1), (big_batch, input_size), jnp.float32)
    outb = jax.block_until_ready(chatnet_forward(xb, prepared_f32))
    refb = chatnet_ref(xb, params)
    assert outb.shape == (big_batch, output_size), outb.shape
    assert jnp.allclose(outb, refb, atol=1e-5, rtol=1e-5), "mismatch (big batch)"

    # bf16 matmul-operand path (v6e/v7x throughput + halved input DMA),
    # f32 accumulation/bias/ReLU; looser tolerance vs. f32 reference.
    prepared_bf16 = prepare_chatnet_params(params, operand_dtype=jnp.bfloat16)
    outb16 = jax.block_until_ready(chatnet_forward(xb, prepared_bf16))
    rel_err = jnp.max(jnp.abs(outb16 - refb)) / (jnp.max(jnp.abs(refb)) + 1e-6)
    assert outb16.shape == (big_batch, output_size), outb16.shape
    assert rel_err < 0.1, f"bf16 path error too large: {rel_err}"

    print("KERNEL_OK")
</pallas_src>

<mosaic_0001>
module attributes {stable_mosaic.version = 11 : i64} {
  func.func @chatnet_kernel(%arg0: i32, %arg1: memref<8x32xf32, #tpu.memory_space<vmem>>, %arg2: memref<32x128xf32, #tpu.memory_space<vmem>>, %arg3: memref<1x128xf32, #tpu.memory_space<vmem>>, %arg4: memref<128x128xf32, #tpu.memory_space<vmem>>, %arg5: memref<1x128xf32, #tpu.memory_space<vmem>>, %arg6: memref<128x16xf32, #tpu.memory_space<vmem>>, %arg7: memref<1x16xf32, #tpu.memory_space<vmem>>, %arg8: memref<8x16xf32, #tpu.memory_space<vmem>>) attributes {dimension_semantics = [#tpu.dimension_semantics<parallel>], iteration_bounds = array<i64: 1>, scalar_prefetch = 0 : i64, scratch_operands = 0 : i64, tpu.core_type = #tpu.core_type<tc>, window_params = [{transform_indices = @transform_0, window_bounds = array<i64: 8, 32>}, {pipeline_mode = #tpu.pipeline_mode<synchronous>, transform_indices = @transform_1, window_bounds = array<i64: 32, 128>}, {pipeline_mode = #tpu.pipeline_mode<synchronous>, transform_indices = @transform_2, window_bounds = array<i64: 1, 128>}, {pipeline_mode = #tpu.pipeline_mode<synchronous>, transform_indices = @transform_3, window_bounds = array<i64: 128, 128>}, {pipeline_mode = #tpu.pipeline_mode<synchronous>, transform_indices = @transform_4, window_bounds = array<i64: 1, 128>}, {pipeline_mode = #tpu.pipeline_mode<synchronous>, transform_indices = @transform_5, window_bounds = array<i64: 128, 16>}, {pipeline_mode = #tpu.pipeline_mode<synchronous>, transform_indices = @transform_6, window_bounds = array<i64: 1, 16>}, {transform_indices = @transform_7, window_bounds = array<i64: 8, 16>}]} {
    %c0 = arith.constant 0 : index
    %c0_0 = arith.constant 0 : index
    %0 = vector.load %arg1[%c0, %c0_0] : memref<8x32xf32, #tpu.memory_space<vmem>>, vector<8x32xf32>
    %c0_1 = arith.constant 0 : index
    %c0_2 = arith.constant 0 : index
    %1 = vector.load %arg2[%c0_1, %c0_2] : memref<32x128xf32, #tpu.memory_space<vmem>>, vector<32x128xf32>
    %cst = arith.constant dense<0.000000e+00> : vector<8x128xf32>
    %2 = tpu.matmul %0, %1, %cst {dimension_numbers = #tpu.dot_dimension_numbers<[1], [0], [0], [1], [0, 0, 1, 1], [], []>} : vector<8x32xf32>, vector<32x128xf32>, vector<8x128xf32> -> vector<8x128xf32>
    %c0_3 = arith.constant 0 : index
    %c0_4 = arith.constant 0 : index
    %3 = vector.load %arg3[%c0_3, %c0_4] : memref<1x128xf32, #tpu.memory_space<vmem>>, vector<1x128xf32>
    %4 = vector.broadcast %3 : vector<1x128xf32> to vector<8x128xf32>
    %5 = arith.addf %2, %4 : vector<8x128xf32>
    %cst_5 = arith.constant 0.000000e+00 : f32
    %6 = vector.broadcast %cst_5 : f32 to vector<8x128xf32>
    %7 = arith.maximumf %5, %6 : vector<8x128xf32>
    %c0_6 = arith.constant 0 : index
    %c0_7 = arith.constant 0 : index
    %8 = vector.load %arg4[%c0_6, %c0_7] : memref<128x128xf32, #tpu.memory_space<vmem>>, vector<128x128xf32>
    %cst_8 = arith.constant dense<0.000000e+00> : vector<8x128xf32>
    %9 = tpu.matmul %7, %8, %cst_8 {dimension_numbers = #tpu.dot_dimension_numbers<[1], [0], [0], [1], [0, 0, 1, 1], [], []>} : vector<8x128xf32>, vector<128x128xf32>, vector<8x128xf32> -> vector<8x128xf32>
    %c0_9 = arith.constant 0 : index
    %c0_10 = arith.constant 0 : index
    %10 = vector.load %arg5[%c0_9, %c0_10] : memref<1x128xf32, #tpu.memory_space<vmem>>, vector<1x128xf32>
    %11 = vector.broadcast %10 : vector<1x128xf32> to vector<8x128xf32>
    %12 = arith.addf %9, %11 : vector<8x128xf32>
    %cst_11 = arith.constant 0.000000e+00 : f32
    %13 = vector.broadcast %cst_11 : f32 to vector<8x128xf32>
    %14 = arith.maximumf %12, %13 : vector<8x128xf32>
    %c0_12 = arith.constant 0 : index
    %c0_13 = arith.constant 0 : index
    %15 = vector.load %arg6[%c0_12, %c0_13] : memref<128x16xf32, #tpu.memory_space<vmem>>, vector<128x16xf32>
    %cst_14 = arith.constant dense<0.000000e+00> : vector<8x16xf32>
    %16 = tpu.matmul %14, %15, %cst_14 {dimension_numbers = #tpu.dot_dimension_numbers<[1], [0], [0], [1], [0, 0, 1, 1], [], []>} : vector<8x128xf32>, vector<128x16xf32>, vector<8x16xf32> -> vector<8x16xf32>
    %c0_15 = arith.constant 0 : index
    %c0_16 = arith.constant 0 : index
    %17 = vector.load %arg7[%c0_15, %c0_16] : memref<1x16xf32, #tpu.memory_space<vmem>>, vector<1x16xf32>
    %18 = vector.broadcast %17 : vector<1x16xf32> to vector<8x16xf32>
    %19 = arith.addf %16, %18 : vector<8x16xf32>
    %c0_17 = arith.constant 0 : index
    %c0_18 = arith.constant 0 : index
    %20 = vector.load %arg8[%c0_17, %c0_18] : memref<8x16xf32, #tpu.memory_space<vmem>>, vector<8x16xf32>
    tpu.vector_store %arg8[%c0_17, %c0_18], %19 {strides = array<i32>} : memref<8x16xf32, #tpu.memory_space<vmem>>, vector<8x16xf32>,
    return
  }
  func.func @transform_0(%arg0: i32) -> (i32, i32) {
    %c0_i32 = arith.constant 0 : i32
    %c0_i32_0 = arith.constant 0 : i32
    return %arg0, %c0_i32 : i32, i32
  }
  func.func @transform_1(%arg0: i32) -> (i32, i32) {
    %c0_i32 = arith.constant 0 : i32
    %c0_i32_0 = arith.constant 0 : i32
    %c0_i32_1 = arith.constant 0 : i32
    return %c0_i32, %c0_i32_0 : i32, i32
  }
  func.func @transform_2(%arg0: i32) -> (i32, i32) {
    %c0_i32 = arith.constant 0 : i32
    %c0_i32_0 = arith.constant 0 : i32
    %c0_i32_1 = arith.constant 0 : i32
    return %c0_i32, %c0_i32_0 : i32, i32
  }
  func.func @transform_3(%arg0: i32) -> (i32, i32) {
    %c0_i32 = arith.constant 0 : i32
    %c0_i32_0 = arith.constant 0 : i32
    %c0_i32_1 = arith.constant 0 : i32
    return %c0_i32, %c0_i32_0 : i32, i32
  }
  func.func @transform_4(%arg0: i32) -> (i32, i32) {
    %c0_i32 = arith.constant 0 : i32
    %c0_i32_0 = arith.constant 0 : i32
    %c0_i32_1 = arith.constant 0 : i32
    return %c0_i32, %c0_i32_0 : i32, i32
  }
  func.func @transform_5(%arg0: i32) -> (i32, i32) {
    %c0_i32 = arith.constant 0 : i32
    %c0_i32_0 = arith.constant 0 : i32
    %c0_i32_1 = arith.constant 0 : i32
    return %c0_i32, %c0_i32_0 : i32, i32
  }
  func.func @transform_6(%arg0: i32) -> (i32, i32) {
    %c0_i32 = arith.constant 0 : i32
    %c0_i32_0 = arith.constant 0 : i32
    %c0_i32_1 = arith.constant 0 : i32
    return %c0_i32, %c0_i32_0 : i32, i32
  }
  func.func @transform_7(%arg0: i32) -> (i32, i32) {
    %c0_i32 = arith.constant 0 : i32
    %c0_i32_0 = arith.constant 0 : i32
    return %arg0, %c0_i32 : i32, i32
  }
}

</mosaic_0001>

<bundles_post_ra>
// kernel: tpu_custom_call.1
= control target key start
LH: loop header
LB: loop body
LE: loop exit
PB: predicated region body
PF: predicated region fallthrough
CT: control target
= control target key end

     0   :  { %12 = vsyncpa [#allocation3], 0  ;;  %s395_s0 = inlined_call_operand.vmem [shape: f32[8,32], index: 0, kind: input, shape index: {}]   ;;  %s396_s1 = inlined_call_operand.hbm [shape: f32[32,128], index: 1, kind: input, shape index: {}]   ;;  %s397_s2 = inlined_call_operand.vmem [shape: f32[1,128], index: 2, kind: input, shape index: {}]   ;;  %s398_s3 = inlined_call_operand.vmem [shape: f32[128,128], index: 3, kind: input, shape index: {}]   ;;  %s399_s4 = inlined_call_operand.vmem [shape: f32[1,128], index: 4, kind: input, shape index: {}]   ;;  %s400_s5 = inlined_call_operand.vmem [shape: f32[128,16], index: 5, kind: input, shape index: {}]   ;;  %s401_s6 = inlined_call_operand.vmem [shape: f32[1,16], index: 6, kind: input, shape index: {}]   ;;  %s402_s7 = inlined_call_operand.hbm [shape: f32[8,16], index: 7, kind: output, shape index: {}]  }
   0x1   :  { %13 = vsyncpa [#allocation4], 0  ;;  %s20_s26 = sshll.u32 %s396_s1, 4  ;;  %s237_s27 = smov [#allocation2]   ;;  %s21_s26 = int_to_ptr.hbm [resolvable:$true] %s20_s26 }
   0x2   :  { %s22_s28 = sshll.u32 %s237_s27, 4  ;;  %s238_s29 = smov 128   ;;  %s23_s28 = int_to_ptr.vmem [resolvable:$true] %s22_s28 }
   0x3   :  { %s239_s30 = smov 8  }
   0x4   :  { %28 = dma.hbm_to_vmem [thread:$0]  %s21_s26, 512, %s23_s28, [#allocation3], %s238_s29, %s238_s29, %s239_s30  }
   0x5   :  { %233 = dma.done.wait [#allocation3], 512  }
   0x6   :  { %234 = vsyncadd [#allocation3], 4294966784  ;;  %v47_v0 = vld [vmem:[#allocation2 + $0x18] sm:$0xff]  ;;  %v46_v1 = vld [vmem:[#allocation2 + $0x10] sm:$0xff]  ;;  %vm52_vm0 = vcmask 261120   ;;  %s240_s25 = smov [#allocation5]  }
   0x7   :  { %68 = vmatpush.msra.mxu0 %v47_v0  ;;  %v92_v2 = vld [vmem:[%s398_s3 + $0x78] sm:$0xff]  ;;  %v45_v3 = vld [vmem:[#allocation2 + $0x8] sm:$0xff]  ;;  %v91_v4 = vld [vmem:[%s398_s3 + $0x70] sm:$0xff]  ;;  %s165_s26 = sshll.u32 %s240_s25, 4  ;;  %s167_s29 = sshll.u32 %s402_s7, 4  ;;  %vm158_vm1 = vcmask 130048   ;;  %s166_s26 = int_to_ptr.vmem [resolvable:$true] %s165_s26  ;;  %s168_s29 = int_to_ptr.hbm [resolvable:$true] %s167_s29 }
   0x8   :  { %97 = vmatpush.msra.mxu1 %v92_v2  ;;  %v90_v5 = vld [vmem:[%s398_s3 + $0x68] sm:$0xff]  ;;  %v44_v6 = vld [vmem:[#allocation2] sm:$0xff]  ;;  %v88_v9 = vld [vmem:[%s398_s3 + $0x58] sm:$0xff] }
   0x9   :  { %69 = vmatpush.msra.mxu0 %v46_v1  ;;  %v43_v7 = vld [vmem:[%s395_s0] sm:$0xff]  ;;  %v87_v10 = vld [vmem:[%s398_s3 + $0x50] sm:$0xff]  ;;  %v86_v11 = vld [vmem:[%s398_s3 + $0x48] sm:$0xff] }
   0xa   :  { %98 = vmatpush.msra.mxu1 %v91_v4  ;;  %v89_v8 = vld [vmem:[%s398_s3 + $0x60] sm:$0xff]  ;;  %v84_v13 = vld [vmem:[%s398_s3 + $0x38] sm:$0xff]  ;;  %v83_v14 = vld [vmem:[%s398_s3 + $0x30] sm:$0xff] }
   0xb   :  { %70 = vmatpush.msra.mxu0 %v45_v3  ;;  %v85_v12 = vld [vmem:[%s398_s3 + $0x40] sm:$0xff]  ;;  %v82_v15 = vld [vmem:[%s398_s3 + $0x28] sm:$0xff]  ;;  %v80_v17 = vld [vmem:[%s398_s3 + $0x18] sm:$0xff] }
   0xc   :  { %99 = vmatpush.msra.mxu1 %v90_v5  ;;  %v81_v16 = vld [vmem:[%s398_s3 + $0x20] sm:$0xff]  ;;  %v79_v18 = vld [vmem:[%s398_s3 + $0x10] sm:$0xff]  ;;  %v78_v19 = vld [vmem:[%s398_s3 + $0x8] sm:$0xff] }
   0xd   :  { %71 = vmatpush.msra.mxu0 %v44_v6  ;;  %v77_v20 = vld [vmem:[%s398_s3] sm:$0xff]  ;;  %v133_v21 = vld [vmem:[%s400_s5 + $0x78] sm:$0xff]  ;;  %v132_v22 = vld [vmem:[%s400_s5 + $0x70] sm:$0xff] }
   0xe   :  { %177 = vmatmul.msk.f32.vlgmr.msra.gmra.mxu0 %vm52_vm0, %v43_v7  ;;  %100 = vmatpush.msra.mxu1 %v89_v8  ;;  %v131_v23 = vld [vmem:[%s400_s5 + $0x68] sm:$0xff]  ;;  %v130_v24 = vld [vmem:[%s400_s5 + $0x60] sm:$0xff]  ;;  %v129_v25 = vld [vmem:[%s400_s5 + $0x58] sm:$0xff] }
   0xf   :  { %138 = vmatpush.msra.mxu2 %v133_v21  ;;  %v128_v26 = vld [vmem:[%s400_s5 + $0x50] sm:$0xff]  ;;  %v127_v27 = vld [vmem:[%s400_s5 + $0x48] sm:$0xff]  ;;  %v126_v28 = vld [vmem:[%s400_s5 + $0x40] sm:$0xff] }
  0x10   :  { %101 = vmatpush.msra.mxu1 %v88_v9  ;;  %v125_v29 = vld [vmem:[%s400_s5 + $0x38] sm:$0xff]  ;;  %v124_v30 = vld [vmem:[%s400_s5 + $0x30] sm:$0xff]  ;;  %v123_v31 = vld [vmem:[%s400_s5 + $0x28] sm:$0xff] }
  0x11   :  { %139 = vmatpush.msra.mxu2 %v132_v22  ;;  %v122_v32 = vld [vmem:[%s400_s5 + $0x20] sm:$0xff]  ;;  %v121_v33 = vld [vmem:[%s400_s5 + $0x18] sm:$0xff]  ;;  %v120_v38 = vld [vmem:[%s400_s5 + $0x10] sm:$0xff] }
  0x12   :  { %102 = vmatpush.msra.mxu1 %v87_v10  ;;  %v182_v34 = vld [vmem:[%s397_s2] ss:$0 sm:$0xff]  ;;  %v119_v39 = vld [vmem:[%s400_s5 + $0x8] sm:$0xff] }
  0x13   :  { %140 = vmatpush.msra.mxu2 %v131_v23  ;;  %v118_v40 = vld [vmem:[%s400_s5] sm:$0xff] }
  0x14   :  { %103 = vmatpush.msra.mxu1 %v86_v11  ;;  %v183_v41 = vld [vmem:[%s399_s4] ss:$0 sm:$0xff] }
  0x15   :  { %141 = vmatpush.msra.mxu2 %v130_v24  ;;  %v184_v45 = vld [vmem:[%s401_s6] ss:$0 sm:$0xff] }
  0x16   :  { %104 = vmatpush.msra.mxu1 %v85_v12 }
  0x17   :  { %142 = vmatpush.msra.mxu2 %v129_v25 }
  0x18   :  { %105 = vmatpush.msra.mxu1 %v84_v13 }
  0x19   :  { %143 = vmatpush.msra.mxu2 %v128_v26 }
  0x1a   :  { %106 = vmatpush.msra.mxu1 %v83_v14 }
  0x1b   :  { %144 = vmatpush.msra.mxu2 %v127_v27 }
  0x1c   :  { %107 = vmatpush.msra.mxu1 %v82_v15 }
  0x1d   :  { %145 = vmatpush.msra.mxu2 %v126_v28 }
  0x1e   :  { %108 = vmatpush.msra.mxu1 %v81_v16 }
  0x1f   :  { %146 = vmatpush.msra.mxu2 %v125_v29 }
  0x20   :  { %109 = vmatpush.msra.mxu1 %v80_v17 }
  0x21   :  { %147 = vmatpush.msra.mxu2 %v124_v30 }
  0x22   :  { %110 = vmatpush.msra.mxu1 %v79_v18 }
  0x23   :  { %148 = vmatpush.msra.mxu2 %v123_v31 }
  0x24   :  { %111 = vmatpush.msra.mxu1 %v78_v19 }
  0x25   :  { %149 = vmatpush.msra.mxu2 %v122_v32 }
  0x26   :  { %112 = vmatpush.msra.mxu1 %v77_v20 }
  0x27   :  { %150 = vmatpush.msra.mxu2 %v121_v33 }
  0x29   :  { %151 = vmatpush.msra.mxu2 %v120_v38 }
  0x2b   :  { %152 = vmatpush.msra.mxu2 %v119_v39 }
  0x2d   :  { %153 = vmatpush.msra.mxu2 %v118_v40 }
  0x8b   :  { %v73_v35 = vpop.f32.mrf.mxu0 }
  0x8c   :  { %v74_v36 = vadd.f32 %v182_v34, %v73_v35 }
  0x8e   :  { %v76_v37 = vmax.f32 %v74_v36, 0.0 }
  0x90   :  { %113 = vmatmul.f32.vlgmr.msra.gmra.mxu1 %v76_v37 }
 0x10d   :  { %v114_v42 = vpop.f32.mrf.mxu1 }
 0x10e   :  { %v115_v43 = vadd.f32 %v183_v41, %v114_v42 }
 0x110   :  { %v117_v44 = vmax.f32 %v115_v43, 0.0 }
 0x112   :  { %154 = vmatmul.f32.vlgmr.msra.gmra.mxu2 %v117_v44 }
 0x195   :  { %v155_v46 = vpop.f32.mrf.mxu2 }
 0x196   :  { %v156_v47 = vadd.f32 %v184_v45, %v155_v46 }
 0x198   :  { %159 = vst.msk [vmem:[#allocation5] sm:$0xff] %vm158_vm1, %v156_v47 }
 0x199   :  { %170 = dma.vmem_to_hbm [thread:$0]  %s166_s26, 128, %s168_s29, [#allocation4]  }
 0x19a   :  { %235 = dma.done.wait [#allocation4], 128  }
 0x19b   :  { %236 = vsyncadd [#allocation4], 4294967168 }
 0x19c   :  { %175 = vsyncpa [#allocation3], 1 }
 0x19d   :  { %176 = vsyncpa [#allocation4], 1 }

</bundles_post_ra>
